<compile_context>
chip_gen: v7x
topology: tpu7x:2x2x1
jax: 0.10.0
libtpu: 0.0.40
codegen_flags: <defaults>
</compile_context>

<pallas_src>
import functools

import jax
import jax.numpy as jnp
from jax import lax
from jax.experimental import pallas as pl
from jax.experimental.pallas import tpu as pltpu

# ---------------- small, BERT-consistent test config ----------------
BATCH = 2
SEQ = 8
HIDDEN = 32
LN_EPS = 1e-12           # config.layer_norm_eps


def _round_up(x, m):
    return (x + m - 1) // m * m


# ---------------- Pallas kernel: dense + residual + masked LayerNorm ----------------
def _bert_self_output_kernel(h_ref, x_ref, w_ref, g_ref, b_ref, o_ref, *, h_valid, eps):
    # h_ref/x_ref/o_ref: (TM, Hp) f32 row tiles; w_ref: (Hp, Hp) bf16 (resident);
    # g_ref/b_ref: (1, Hp) f32 (resident).  Hp is the 128-padded hidden size.
    # dense (bias=False): bf16 MXU operands, f32 accumulation; then residual in f32.
    y = jnp.dot(h_ref[...].astype(jnp.bfloat16), w_ref[...],
                preferred_element_type=jnp.float32) + x_ref[...]

    hp = y.shape[-1]
    if h_valid == hp:
        # hidden size already lane-aligned: plain LayerNorm reductions.
        u = jnp.mean(y, axis=-1, keepdims=True)
        d = y - u
        s = jnp.mean(d * d, axis=-1, keepdims=True)
    else:
        # mask out the zero-padded lanes so mean/var are over the true H columns.
        lane = lax.broadcasted_iota(jnp.int32, (1, hp), 1)
        mask = lane < h_valid
        inv_h = 1.0 / h_valid
        ym = jnp.where(mask, y, 0.0)
        u = jnp.sum(ym, axis=-1, keepdims=True) * inv_h
        d = jnp.where(mask, y - u, 0.0)
        s = jnp.sum(d * d, axis=-1, keepdims=True) * inv_h

    # TF-style LN (epsilon inside the square root); rsqrt -> EUP slot.
    o_ref[...] = g_ref[...] * (d * lax.rsqrt(s + eps)) + b_ref[...]


# ---------------- wrapper ----------------
def bert_self_output(hidden_states, input_tensor, weight, gamma, beta, *, block_rows=512):
    """hidden_states/input_tensor: (B, S, H); weight: (H, H) stored [in, out] (== torch W.T);
    gamma/beta: (H,).  Returns (B, S, H) f32."""
    B, S, H = hidden_states.shape
    M = B * S

    Hp = _round_up(H, 128)                       # lane-dense hidden dim
    TM = min(block_rows, _round_up(M, 8))        # row tile (multiple of 8 sublanes)
    Mp = _round_up(M, TM)                        # padded row count
    grid = (Mp // TM,)

    # zero-pad to lane/sublane-aligned slabs (no-op reshapes at production BERT sizes)
    h2d = jnp.zeros((Mp, Hp), jnp.float32).at[:M, :H].set(
        hidden_states.reshape(M, H).astype(jnp.float32))
    x2d = jnp.zeros((Mp, Hp), jnp.float32).at[:M, :H].set(
        input_tensor.reshape(M, H).astype(jnp.float32))
    w_p = jnp.zeros((Hp, Hp), jnp.bfloat16).at[:H, :H].set(weight.astype(jnp.bfloat16))
    g_p = jnp.zeros((1, Hp), jnp.float32).at[:, :H].set(gamma.reshape(1, H).astype(jnp.float32))
    b_p = jnp.zeros((1, Hp), jnp.float32).at[:, :H].set(beta.reshape(1, H).astype(jnp.float32))

    kernel = functools.partial(_bert_self_output_kernel, h_valid=H, eps=LN_EPS)

    cost = pl.CostEstimate(
        flops=2 * Mp * Hp * Hp + 8 * Mp * Hp,            # dense + residual/LN elementwise
        transcendentals=Mp,                              # one rsqrt per row
        bytes_accessed=3 * Mp * Hp * 4 + Hp * Hp * 2 + 2 * Hp * 4,
    )

    out2d = pl.pallas_call(
        kernel,
        out_shape=jax.ShapeDtypeStruct((Mp, Hp), jnp.float32),
        grid_spec=pltpu.PrefetchScalarGridSpec(
            num_scalar_prefetch=0,
            grid=grid,
            in_specs=[
                pl.BlockSpec((TM, Hp), lambda i: (i, 0)),    # hidden_states row tile
                pl.BlockSpec((TM, Hp), lambda i: (i, 0)),    # residual row tile
                pl.BlockSpec((Hp, Hp), lambda i: (0, 0)),    # weight: VMEM-resident
                pl.BlockSpec((1, Hp), lambda i: (0, 0)),     # gamma: resident
                pl.BlockSpec((1, Hp), lambda i: (0, 0)),     # beta: resident
            ],
            out_specs=pl.BlockSpec((TM, Hp), lambda i: (i, 0)),
        ),
        compiler_params=pltpu.CompilerParams(
            dimension_semantics=("parallel",),   # shard row tiles across TCs (v7x)
        ),
        cost_estimate=cost,
    )(h2d, x2d, w_p, g_p, b_p)

    return out2d[:M, :H].reshape(B, S, H)


# ---------------- pure-JAX reference (matches the torch module, exact f32) ----------------
def reference_forward(hidden_states, input_tensor, weight, gamma, beta):
    y = hidden_states @ weight + input_tensor          # dense(bias=False) + dropout(id) + residual
    u = y.mean(-1, keepdims=True)
    s = ((y - u) ** 2).mean(-1, keepdims=True)
    return gamma * ((y - u) / jnp.sqrt(s + LN_EPS)) + beta


if __name__ == "__main__":
    key = jax.random.PRNGKey(0)
    k_h, k_x, k_w = jax.random.split(key, 3)

    hidden_states = jax.random.normal(k_h, (BATCH, SEQ, HIDDEN), jnp.float32)
    input_tensor = jax.random.normal(k_x, (BATCH, SEQ, HIDDEN), jnp.float32)
    weight = 0.02 * jax.random.normal(k_w, (HIDDEN, HIDDEN), jnp.float32)  # [in, out] == torch W.T
    gamma = jnp.ones((HIDDEN,), jnp.float32)
    beta = jnp.zeros((HIDDEN,), jnp.float32)

    # TODO(synk): nn.Dropout is identity here (inference semantics); no train-mode RNG dropout.
    out = jax.jit(bert_self_output)(hidden_states, input_tensor, weight, gamma, beta)
    jax.block_until_ready(out)

    with jax.default_matmul_precision("float32"):
        ref = jax.jit(reference_forward)(hidden_states, input_tensor, weight, gamma, beta)
        jax.block_until_ready(ref)

    assert out.shape == (BATCH, SEQ, HIDDEN)
    max_err = jnp.max(jnp.abs(out - ref))
    # bf16 MXU operands (f32 accumulation) vs exact-f32 reference -> loosened tolerance.
    assert jnp.allclose(out, ref, atol=2e-2, rtol=2e-2), f"mismatch: {max_err}"
    print("KERNEL_OK")
</pallas_src>

<mosaic_0001>
module attributes {stable_mosaic.version = 11 : i64} {
  func.func @_bert_self_output_kernel(%arg0: i32, %arg1: memref<16x128xf32, #tpu.memory_space<vmem>>, %arg2: memref<16x128xf32, #tpu.memory_space<vmem>>, %arg3: memref<128x128xbf16, #tpu.memory_space<vmem>>, %arg4: memref<1x128xf32, #tpu.memory_space<vmem>>, %arg5: memref<1x128xf32, #tpu.memory_space<vmem>>, %arg6: memref<16x128xf32, #tpu.memory_space<vmem>>) attributes {dimension_semantics = [#tpu.dimension_semantics<parallel>], iteration_bounds = array<i64: 1>, scalar_prefetch = 0 : i64, scratch_operands = 0 : i64, tpu.core_type = #tpu.core_type<tc>, window_params = [{transform_indices = @transform_0, window_bounds = array<i64: 16, 128>}, {transform_indices = @transform_1, window_bounds = array<i64: 16, 128>}, {pipeline_mode = #tpu.pipeline_mode<synchronous>, transform_indices = @transform_2, window_bounds = array<i64: 128, 128>}, {pipeline_mode = #tpu.pipeline_mode<synchronous>, transform_indices = @transform_3, window_bounds = array<i64: 1, 128>}, {pipeline_mode = #tpu.pipeline_mode<synchronous>, transform_indices = @transform_4, window_bounds = array<i64: 1, 128>}, {transform_indices = @transform_5, window_bounds = array<i64: 16, 128>}]} {
    %c0 = arith.constant 0 : index
    %c0_0 = arith.constant 0 : index
    %0 = vector.load %arg1[%c0, %c0_0] : memref<16x128xf32, #tpu.memory_space<vmem>>, vector<16x128xf32>
    %1 = arith.truncf %0 : vector<16x128xf32> to vector<16x128xbf16>
    %c0_1 = arith.constant 0 : index
    %c0_2 = arith.constant 0 : index
    %2 = vector.load %arg3[%c0_1, %c0_2] : memref<128x128xbf16, #tpu.memory_space<vmem>>, vector<128x128xbf16>
    %cst = arith.constant dense<0.000000e+00> : vector<16x128xf32>
    %3 = tpu.matmul %1, %2, %cst {dimension_numbers = #tpu.dot_dimension_numbers<[1], [0], [0], [1], [0, 0, 1, 1], [], []>} : vector<16x128xbf16>, vector<128x128xbf16>, vector<16x128xf32> -> vector<16x128xf32>
    %c0_3 = arith.constant 0 : index
    %c0_4 = arith.constant 0 : index
    %4 = vector.load %arg2[%c0_3, %c0_4] : memref<16x128xf32, #tpu.memory_space<vmem>>, vector<16x128xf32>
    %5 = arith.addf %3, %4 : vector<16x128xf32>
    %6 = tpu.iota {dimensions = array<i32: 1>} : vector<1x128xi32>
    %c32_i32 = arith.constant 32 : i32
    %7 = vector.broadcast %c32_i32 : i32 to vector<1x128xi32>
    %8 = arith.cmpi slt, %6, %7 : vector<1x128xi32>
    %cst_5 = arith.constant 0.000000e+00 : f32
    %9 = vector.shape_cast %8 : vector<1x128xi1> to vector<1x128xi1>
    %10 = vector.broadcast %9 : vector<1x128xi1> to vector<16x128xi1>
    %11 = vector.broadcast %cst_5 : f32 to vector<16x128xf32>
    %12 = arith.select %10, %5, %11 : vector<16x128xi1>, vector<16x128xf32>
    %cst_6 = arith.constant dense<0.000000e+00> : vector<16xf32>
    %13 = vector.multi_reduction <add>, %12, %cst_6 [1] : vector<16x128xf32> to vector<16xf32>
    %14 = vector.shape_cast %13 : vector<16xf32> to vector<16x1xf32>
    %cst_7 = arith.constant 3.125000e-02 : f32
    %15 = vector.broadcast %cst_7 : f32 to vector<16x1xf32>
    %16 = arith.mulf %14, %15 : vector<16x1xf32>
    %17 = vector.broadcast %16 : vector<16x1xf32> to vector<16x128xf32>
    %18 = arith.subf %5, %17 : vector<16x128xf32>
    %cst_8 = arith.constant 0.000000e+00 : f32
    %19 = vector.shape_cast %8 : vector<1x128xi1> to vector<1x128xi1>
    %20 = vector.broadcast %19 : vector<1x128xi1> to vector<16x128xi1>
    %21 = vector.broadcast %cst_8 : f32 to vector<16x128xf32>
    %22 = arith.select %20, %18, %21 : vector<16x128xi1>, vector<16x128xf32>
    %23 = arith.mulf %22, %22 : vector<16x128xf32>
    %cst_9 = arith.constant dense<0.000000e+00> : vector<16xf32>
    %24 = vector.multi_reduction <add>, %23, %cst_9 [1] : vector<16x128xf32> to vector<16xf32>
    %25 = vector.shape_cast %24 : vector<16xf32> to vector<16x1xf32>
    %cst_10 = arith.constant 3.125000e-02 : f32
    %26 = vector.broadcast %cst_10 : f32 to vector<16x1xf32>
    %27 = arith.mulf %25, %26 : vector<16x1xf32>
    %c0_11 = arith.constant 0 : index
    %c0_12 = arith.constant 0 : index
    %28 = vector.load %arg4[%c0_11, %c0_12] : memref<1x128xf32, #tpu.memory_space<vmem>>, vector<1x128xf32>
    %cst_13 = arith.constant 9.99999996E-13 : f32
    %29 = vector.broadcast %cst_13 : f32 to vector<16x1xf32>
    %30 = arith.addf %27, %29 : vector<16x1xf32>
    %31 = math.rsqrt %30 : vector<16x1xf32>
    %32 = vector.broadcast %31 : vector<16x1xf32> to vector<16x128xf32>
    %33 = arith.mulf %22, %32 : vector<16x128xf32>
    %34 = vector.broadcast %28 : vector<1x128xf32> to vector<16x128xf32>
    %35 = arith.mulf %34, %33 : vector<16x128xf32>
    %c0_14 = arith.constant 0 : index
    %c0_15 = arith.constant 0 : index
    %36 = vector.load %arg5[%c0_14, %c0_15] : memref<1x128xf32, #tpu.memory_space<vmem>>, vector<1x128xf32>
    %37 = vector.broadcast %36 : vector<1x128xf32> to vector<16x128xf32>
    %38 = arith.addf %35, %37 : vector<16x128xf32>
    %c0_16 = arith.constant 0 : index
    %c0_17 = arith.constant 0 : index
    %39 = vector.load %arg6[%c0_16, %c0_17] : memref<16x128xf32, #tpu.memory_space<vmem>>, vector<16x128xf32>
    tpu.vector_store %arg6[%c0_16, %c0_17], %38 {strides = array<i32>} : memref<16x128xf32, #tpu.memory_space<vmem>>, vector<16x128xf32>,
    return
  }
  func.func @transform_0(%arg0: i32) -> (i32, i32) {
    %c0_i32 = arith.constant 0 : i32
    %c0_i32_0 = arith.constant 0 : i32
    return %arg0, %c0_i32 : i32, i32
  }
  func.func @transform_1(%arg0: i32) -> (i32, i32) {
    %c0_i32 = arith.constant 0 : i32
    %c0_i32_0 = arith.constant 0 : i32
    return %arg0, %c0_i32 : i32, i32
  }
  func.func @transform_2(%arg0: i32) -> (i32, i32) {
    %c0_i32 = arith.constant 0 : i32
    %c0_i32_0 = arith.constant 0 : i32
    %c0_i32_1 = arith.constant 0 : i32
    return %c0_i32, %c0_i32_0 : i32, i32
  }
  func.func @transform_3(%arg0: i32) -> (i32, i32) {
    %c0_i32 = arith.constant 0 : i32
    %c0_i32_0 = arith.constant 0 : i32
    %c0_i32_1 = arith.constant 0 : i32
    return %c0_i32, %c0_i32_0 : i32, i32
  }
  func.func @transform_4(%arg0: i32) -> (i32, i32) {
    %c0_i32 = arith.constant 0 : i32
    %c0_i32_0 = arith.constant 0 : i32
    %c0_i32_1 = arith.constant 0 : i32
    return %c0_i32, %c0_i32_0 : i32, i32
  }
  func.func @transform_5(%arg0: i32) -> (i32, i32) {
    %c0_i32 = arith.constant 0 : i32
    %c0_i32_0 = arith.constant 0 : i32
    return %arg0, %c0_i32 : i32, i32
  }
}

</mosaic_0001>

<bundles_post_ra>
// kernel: bert_self_output.1
= control target key start
LH: loop header
LB: loop body
LE: loop exit
PB: predicated region body
PF: predicated region fallthrough
CT: control target
= control target key end

     0   :  { %v239_v0 = vmov 0.0   ;;  %vm240_vm0 = vmmov 0   ;;  %v131_v12 = vlaneseq  ;;  %s323_s2 = inlined_call_operand.vmem [shape: bf16[128,128], index: 2, kind: input, shape index: {}]   ;;  %s324_s0 = inlined_call_operand.vmem [shape: f32[16,128], index: 0, kind: input, shape index: {}]   ;;  %s325_s1 = inlined_call_operand.vmem [shape: f32[16,128], index: 1, kind: input, shape index: {}]   ;;  %s326_s3 = inlined_call_operand.vmem [shape: f32[1,128], index: 3, kind: input, shape index: {}]   ;;  %s327_s4 = inlined_call_operand.vmem [shape: f32[1,128], index: 4, kind: input, shape index: {}]   ;;  %s328_s5 = inlined_call_operand.vmem [shape: f32[16,128], index: 5, kind: output, shape index: {}]  }
   0x1   :  { %205 = vmatprep.subr.bf16.mxu0 %v239_v0  ;;  %v227_v1 = vld [vmem:[%s323_s2] sm:$0xff]   ;;  %221 = vmatprep.mubr.msk.bf16.mxu0 %vm240_vm0, %v239_v0  ;;  %v228_v2 = vld [vmem:[%s323_s2 + $0x8] sm:$0xff]   ;;  %v229_v3 = vld [vmem:[%s323_s2 + $0x10] sm:$0xff]  }
   0x2   :  { %206 = vmatpush3.bf16.msra.mxu0 %v227_v1  ;;  %v230_v4 = vld [vmem:[%s323_s2 + $0x18] sm:$0xff]   ;;  %v231_v5 = vld [vmem:[%s323_s2 + $0x20] sm:$0xff]   ;;  %v232_v6 = vld [vmem:[%s323_s2 + $0x28] sm:$0xff]   ;;  %v132_v13 = vand.u32 127, %v131_v12 }
   0x3   :  { %207 = vmatprep.subr.bf16.mxu0 %v239_v0  ;;  %v233_v7 = vld [vmem:[%s323_s2 + $0x30] sm:$0xff]   ;;  %v234_v8 = vld [vmem:[%s323_s2 + $0x38] sm:$0xff]   ;;  %v21_v9 = vld [vmem:[%s324_s0] sm:$0xff] }
   0x4   :  { %v22_v10 = vld [vmem:[%s324_s0 + $0x8] sm:$0xff]  ;;  %v40_v14 = vld [vmem:[%s325_s1] sm:$0xff]  ;;  %vm133_vm1 = vcmp.lt.s32.totalorder %v132_v13, 32 }
   0x5   :  { %v23_v11 = vpack.c.bf16 %v22_v10, %v21_v9  ;;  %v41_v16 = vld [vmem:[%s325_s1 + $0x8] sm:$0xff]  ;;  %v194_v41 = vld [vmem:[%s326_s3] ss:$0 sm:$0xff] }
   0x6   :  { %208 = vmatpush3.bf16.msra.mxu0 %v228_v2  ;;  %v195_v43 = vld [vmem:[%s327_s4] ss:$0 sm:$0xff] }
   0x7   :  { %209 = vmatprep.subr.bf16.mxu0 %v239_v0 }
   0xa   :  { %210 = vmatpush3.bf16.msra.mxu0 %v229_v3 }
   0xb   :  { %211 = vmatprep.subr.bf16.mxu0 %v239_v0 }
   0xe   :  { %212 = vmatpush3.bf16.msra.mxu0 %v230_v4 }
   0xf   :  { %213 = vmatprep.subr.bf16.mxu0 %v239_v0 }
  0x12   :  { %214 = vmatpush3.bf16.msra.mxu0 %v231_v5 }
  0x13   :  { %215 = vmatprep.subr.bf16.mxu0 %v239_v0 }
  0x16   :  { %216 = vmatpush3.bf16.msra.mxu0 %v232_v6 }
  0x17   :  { %217 = vmatprep.subr.bf16.mxu0 %v239_v0 }
  0x1a   :  { %218 = vmatpush3.bf16.msra.mxu0 %v233_v7 }
  0x1b   :  { %219 = vmatprep.subr.bf16.mxu0 %v239_v0 }
  0x1e   :  { %220 = vmatpush3.bf16.msra.mxu0 %v234_v8 }
  0x21   :  { %222 = vmatmul.mubr.bf16.vlgmr.msra.gmra.mrb[0].mxu0 %v23_v11 }
  0xf4   :  { %v124_v15 = vpop.f32.mrb[0].mxu0 }
  0xf5   :  { %v125_v17 = vadd.f32 %v124_v15, %v40_v14  ;;  %v223_v18 = vpop.f32.mrb[1].mxu0 }
  0xf6   :  { %v127_v19 = vpop.f32.mrb[2].mxu0 }
  0xf7   :  { %v128_v20 = vadd.f32 %v127_v19, %v41_v16  ;;  %v224_v21 = vpop.f32.mrb[3].mxu0  ;;  %v136_v22 = vsel %vm133_vm1, %v125_v17, 0.0 }
  0xf8   :  { %138 = vadd.xlane.f32.xlu0 %v136_v22 }
  0xf9   :  { %v137_v23 = vsel %vm133_vm1, %v128_v20, 0.0 }
  0xfc   :  { %140 = vadd.xlane.f32.xlu0 %v137_v23 }
 0x185   :  { %v139_v24 = vpop.xlane.xlu0 %138 }
 0x186   :  { %v142_v25 = vmul.f32 0.03125, %v139_v24 }
 0x188   :  { %v144_v26 = vsub.f32 %v125_v17, %v142_v25 }
 0x189   :  { %v141_v27 = vpop.xlane.xlu0 %140 }
 0x18a   :  { %v143_v28 = vmul.f32 0.03125, %v141_v27  ;;  %v146_v29 = vsel %vm133_vm1, %v144_v26, 0.0 }
 0x18b   :  { %v148_v30 = vmul.f32 %v146_v29, %v146_v29 }
 0x18c   :  { %v145_v31 = vsub.f32 %v128_v20, %v143_v28 }
 0x18d   :  { %150 = vadd.xlane.f32.xlu1 %v148_v30 }
 0x18e   :  { %v147_v32 = vsel %vm133_vm1, %v145_v31, 0.0 }
 0x18f   :  { %v149_v33 = vmul.f32 %v147_v32, %v147_v32 }
 0x191   :  { %152 = vadd.xlane.f32.xlu1 %v149_v33 }
 0x21a   :  { %v151_v34 = vpop.xlane.xlu1 %150 }
 0x21b   :  { %v154_v35 = vmul.f32 0.03125, %v151_v34 }
 0x21d   :  { %v157_v36 = vadd.f32 1e-12, %v154_v35 }
 0x21e   :  { %v153_v37 = vpop.xlane.xlu1 %152 }
 0x21f   :  { %235 = vrsqrt.f32 %v157_v36  ;;  %v155_v38 = vmul.f32 0.03125, %v153_v37 }
 0x221   :  { %v158_v39 = vadd.f32 1e-12, %v155_v38 }
 0x223   :  { %237 = vrsqrt.f32 %v158_v39 }
 0x229   :  { %v236_v40 = vpop.eup %235 }
 0x22a   :  { %v161_v42 = vmul.f32 %v236_v40, %v146_v29 }
 0x22c   :  { %v169_v44 = vmul.f32 %v194_v41, %v161_v42 }
 0x22d   :  { %v238_v45 = vpop.eup %237 }
 0x22e   :  { %v178_v46 = vadd.f32 %v195_v43, %v169_v44  ;;  %v162_v47 = vmul.f32 %v238_v45, %v147_v32 }
 0x230   :  { %180 = vst [vmem:[%s328_s5] sm:$0xff] %v178_v46  ;;  %v170_v48 = vmul.f32 %v194_v41, %v162_v47 }
 0x232   :  { %v179_v49 = vadd.f32 %v195_v43, %v170_v48 }
 0x234   :  { %181 = vst [vmem:[%s328_s5 + $0x8] sm:$0xff] %v179_v49 }

</bundles_post_ra>
